<compile_context>
chip_gen: v7x
topology: tpu7x:2x2x1
jax: 0.10.0
libtpu: 0.0.40
codegen_flags: <defaults>
</compile_context>

<pallas_src>
import jax
import jax.numpy as jnp
import numpy as np
from jax.experimental import pallas as pl
from jax.experimental.pallas import tpu as pltpu


def _hbm_copy_kernel(x_hbm_ref, o_hbm_ref, copy_sem):
    # Single HBM -> HBM DMA: no VMEM round-trip, no per-tile grid overhead.
    cp = pltpu.make_async_copy(x_hbm_ref, o_hbm_ref, copy_sem)
    cp.start()
    cp.wait()


def _bev_identity_copy(bev_embed):
    """Materialized identity copy of the BEV embedding via one HBM->HBM DMA.

    Note: `bev_embed` is used as-is (no reshape), so there is no risk of a
    hidden XLA layout copy in the wrapper; the DMA engine copies the buffer
    exactly as laid out in HBM.
    """
    total_bytes = int(np.prod(bev_embed.shape)) * jnp.dtype(bev_embed.dtype).itemsize

    return pl.pallas_call(
        _hbm_copy_kernel,
        out_shape=jax.ShapeDtypeStruct(bev_embed.shape, bev_embed.dtype),
        in_specs=[pl.BlockSpec(memory_space=pl.ANY)],
        out_specs=pl.BlockSpec(memory_space=pl.ANY),
        scratch_shapes=[pltpu.SemaphoreType.DMA],
        cost_estimate=pl.CostEstimate(
            flops=0, transcendentals=0, bytes_accessed=2 * total_bytes
        ),
    )(bev_embed)


def bev_only_fuser(inputs, in_channels: int = None, out_channels: int = None,
                   *, materialize_copy: bool = False):
    """Pallas/JAX equivalent of BEVOnlyFuser.forward.

    Args:
      inputs: list of arrays; inputs[0] is the BEV embedding (B, C, H, W).
      in_channels / out_channels: kept for API parity with the nn.Module
        __init__ (unused in forward, exactly as in PyTorch).
      materialize_copy: if False (default), return inputs[0] directly — the
        exact module semantics with zero HBM traffic.  If True, route the
        tensor through a single HBM->HBM DMA Pallas kernel (useful only when a
        fresh device buffer is explicitly required).
    """
    del in_channels, out_channels  # unused in the reference forward
    bev_embed = inputs[0]
    if not materialize_copy:
        # Fastest path: the reference forward is a pure pass-through.
        return bev_embed
    return _bev_identity_copy(bev_embed)


if __name__ == "__main__":
    key = jax.random.PRNGKey(0)
    k0, k1 = jax.random.split(key)

    # BEVOnlyFuser(in_channels, out_channels) — no learned parameters exist in
    # the reference module, so nothing to initialize beyond the config ints.
    in_channels, out_channels = 4, 4

    # inputs[0]: BEV embedding (NCHW); inputs[1]: an extra modality feature
    # that the fuser is configured to ignore.
    bev_embed = jax.random.normal(k0, (2, 4, 16, 16), dtype=jnp.float32)
    other_feat = jax.random.normal(k1, (2, 4, 16, 16), dtype=jnp.float32)
    inputs = [bev_embed, other_feat]

    # Default (optimal) path: pure pass-through, no kernel, no copy.
    out_fast = bev_only_fuser(inputs, in_channels, out_channels)
    assert out_fast is bev_embed

    # Pallas DMA-copy path: run once to validate the kernel end to end.
    out = bev_only_fuser(inputs, in_channels, out_channels,
                         materialize_copy=True)
    out = jax.block_until_ready(out)

    assert out.shape == bev_embed.shape
    assert out.dtype == bev_embed.dtype
    assert bool(jnp.array_equal(out, bev_embed))

    print("KERNEL_OK")
</pallas_src>

<mosaic_0001>
module attributes {stable_mosaic.version = 11 : i64} {
  func.func @_hbm_copy_kernel(%arg0: memref<2x4x16x16xf32, #tpu.memory_space<any>>, %arg1: memref<2x4x16x16xf32, #tpu.memory_space<any>>, %arg2: memref<!tpu.dma_semaphore, #tpu.memory_space<semaphore_mem>>) attributes {dimension_semantics = [], scalar_prefetch = 0 : i64, scratch_operands = 1 : i64, tpu.core_type = #tpu.core_type<tc>} {
    tpu.enqueue_dma source(%arg0 : memref<2x4x16x16xf32, #tpu.memory_space<any>>) target(%arg1 : memref<2x4x16x16xf32, #tpu.memory_space<any>>) target_semaphore(%arg2 : memref<!tpu.dma_semaphore, #tpu.memory_space<semaphore_mem>>)
    tpu.wait_dma2 semaphore(%arg2 : memref<!tpu.dma_semaphore, #tpu.memory_space<semaphore_mem>>) src(%arg0 : memref<2x4x16x16xf32, #tpu.memory_space<any>>) dst(%arg1 : memref<2x4x16x16xf32, #tpu.memory_space<any>>)
    return
  }
}

</mosaic_0001>

<bundles_post_ra>
// kernel: tpu_custom_call.1
= control target key start
LH: loop header
LB: loop body
LE: loop exit
PB: predicated region body
PF: predicated region fallthrough
CT: control target
= control target key end

     0   :  { %s36_s6 = smov [#allocation2]   ;;  %s37_s7 = smov [#allocation3]   ;;  %s55_s0 = inlined_call_operand.hbm [shape: f32[2,4,16,16], index: 0, kind: input, shape index: {}]   ;;  %s56_s1 = inlined_call_operand.hbm [shape: f32[2,4,16,16], index: 1, kind: output, shape index: {}]  }
   0x1   :  { %s38_s8 = smov 0  }
   0x2   :  { %18 = dma.general %s55_s0, 2048, %s56_s1, %s36_s6, %s37_s7, [#allocation4], %s38_s8, 0  }
   0x3   :  { %34 = dma.done.wait [#allocation2], 2048 }
   0x4   :  { %35 = vsyncadd [#allocation2], 4294965248 }
   0x5   :  { %24 = vsyncmov [#allocation2] }
   0x8   :  { %s25_s13 = vpop.sfrf %24 }
   0x9   :  { %p30_p0 = scmp.ne.s32.totalorder %s25_s13, 0 }
   0xb   :  { %29 = shalt.err (%p30_p0)  }

</bundles_post_ra>
